<compile_context>
chip_gen: v5e
topology: v5e:2x2
jax: 0.10.0
libtpu: 0.0.40
codegen_flags: <defaults>
</compile_context>

<pallas_src>
import functools

import jax
import jax.numpy as jnp
from jax.experimental import pallas as pl
from jax.experimental.pallas import tpu as pltpu

LANES = 128
_TARGET_BLOCK_BYTES = 6 * 1024 * 1024  # ~6 MiB per data block


def _sublane_align(dtype) -> int:
    itemsize = jnp.dtype(dtype).itemsize
    if itemsize >= 4:
        return 8
    if itemsize == 2:
        return 16
    return 32


def _golu_exp_kernel(alpha_ref, beta_ref, gamma_ref, z_ref, o_ref):
    z = z_ref[...].astype(jnp.float32)
    a = alpha_ref[0]
    b = beta_ref[0]
    g = gamma_ref[0]
    o_ref[...] = (z * a * jnp.exp(-b * jnp.exp(-g * z))).astype(o_ref.dtype)


def _golu_tanh_kernel(alpha_ref, beta_ref, gamma_ref, z_ref, o_ref):
    # Mirrors the PyTorch tanh approximator op-for-op (same numerics).
    z = z_ref[...].astype(jnp.float32)
    a = alpha_ref[0]
    b = beta_ref[0]
    g = gamma_ref[0]
    u = -b * jnp.exp(-g * z)
    t = jnp.tanh(u)
    gate = jnp.sqrt((1.0 + t) / (1.0 - t))
    o_ref[...] = (z * a * gate).astype(o_ref.dtype)


def _golu_jnp(z, a, b, g, use_tanh):
    """Plain-jnp fallback for the (tiny) unaligned tail."""
    zf = z.astype(jnp.float32)
    if use_tanh:
        u = -b * jnp.exp(-g * zf)
        t = jnp.tanh(u)
        out = zf * a * jnp.sqrt((1.0 + t) / (1.0 - t))
    else:
        out = zf * a * jnp.exp(-b * jnp.exp(-g * zf))
    return out.astype(z.dtype)


@functools.partial(jax.jit, static_argnames=("approximator", "donate_input"))
def golu(z, alpha, beta, gamma, approximator="exp", donate_input=False):
    """GoLU activation. z: any-shape float tensor; alpha/beta/gamma: scalars."""
    orig_shape = z.shape
    orig_dtype = z.dtype
    n = z.size
    if n == 0:
        return z

    use_tanh = approximator == "tanh"
    kernel = _golu_tanh_kernel if use_tanh else _golu_exp_kernel

    # Learnable scalars stay fp32 in SMEM regardless of activation dtype.
    a = jnp.asarray(alpha, dtype=jnp.float32).reshape(1)
    b = jnp.asarray(beta, dtype=jnp.float32).reshape(1)
    g = jnp.asarray(gamma, dtype=jnp.float32).reshape(1)

    align = _sublane_align(orig_dtype)
    chunk = align * LANES
    itemsize = jnp.dtype(orig_dtype).itemsize

    flat = z.reshape(-1)
    n_main = (n // chunk) * chunk  # chunk-aligned prefix handled by the kernel

    main_out = None
    if n_main > 0:
        slab = flat[:n_main].reshape(-1, LANES)  # [rows, 128], lane-dense
        rows = slab.shape[0]                     # multiple of `align`

        target_rows = max(
            align, (_TARGET_BLOCK_BYTES // (LANES * itemsize)) // align * align
        )
        block_rows = min(target_rows, rows)
        # Keep grid length >= 2 so the parallel axis can be sharded across
        # TensorCores (v7x megacore) even for mid-size tensors.
        if block_rows >= rows and rows >= 2 * align:
            block_rows = pl.cdiv(pl.cdiv(rows, 2), align) * align
        grid = (pl.cdiv(rows, block_rows),)

        block_bytes = block_rows * LANES * itemsize
        # in + out, double-buffered, plus headroom; explicit so v5e's 16 MiB
        # scoped default does not silently shrink pipelining.
        vmem_limit = max(32 * 1024 * 1024, 4 * block_bytes + 2 * 1024 * 1024)

        if use_tanh:
            flops, transc = 10 * n_main, 3 * n_main
        else:
            flops, transc = 6 * n_main, 2 * n_main
        cost = pl.CostEstimate(
            flops=flops,
            transcendentals=transc,
            bytes_accessed=2 * n_main * itemsize,
        )

        kwargs = {}
        if donate_input:
            # Caller guarantees z can be donated: alias slab -> output buffer.
            kwargs["input_output_aliases"] = {3: 0}

        out = pl.pallas_call(
            kernel,
            out_shape=jax.ShapeDtypeStruct((rows, LANES), slab.dtype),
            grid=grid,
            in_specs=[
                pl.BlockSpec(memory_space=pltpu.SMEM),  # alpha
                pl.BlockSpec(memory_space=pltpu.SMEM),  # beta
                pl.BlockSpec(memory_space=pltpu.SMEM),  # gamma
                pl.BlockSpec((block_rows, LANES), lambda i: (i, 0)),
            ],
            out_specs=pl.BlockSpec((block_rows, LANES), lambda i: (i, 0)),
            compiler_params=pltpu.CompilerParams(
                dimension_semantics=(pltpu.PARALLEL,),
                vmem_limit_bytes=int(vmem_limit),
            ),
            cost_estimate=cost,
            **kwargs,
        )(a, b, g, slab)
        main_out = out.reshape(-1)

    if n_main == n:
        result = main_out
    else:
        tail_out = _golu_jnp(flat[n_main:], a, b, g, use_tanh)
        if main_out is None:
            result = tail_out
        else:
            result = jnp.concatenate([main_out, tail_out])

    return result.reshape(orig_shape)


def _clamp_scalar(v, bounds):
    if not bounds:
        return v
    assert len(bounds) in (1, 2)
    if len(bounds) == 1:
        return jnp.maximum(v, jnp.float32(bounds[0]))
    return jnp.clip(v, jnp.float32(bounds[0]), jnp.float32(bounds[1]))


class GoLUPallas:
    """Mirror of the PyTorch GoLU module (forward only)."""

    def __init__(self, alpha=1.0, beta=1.0, gamma=1.0, approximator="exp",
                 requires_grad=(False, False, False),
                 clamp_alpha=(), clamp_beta=(), clamp_gamma=()):
        self.alpha = jnp.float32(alpha)
        self.beta = jnp.float32(beta)
        self.gamma = jnp.float32(gamma)
        self.approximator = approximator
        self.clamp_alpha = list(clamp_alpha)
        self.clamp_beta = list(clamp_beta)
        self.clamp_gamma = list(clamp_gamma)
        del requires_grad  # TODO(synk): training of gate params not supported.

    def clamp_params_(self):
        self.alpha = _clamp_scalar(self.alpha, self.clamp_alpha)
        self.beta = _clamp_scalar(self.beta, self.clamp_beta)
        self.gamma = _clamp_scalar(self.gamma, self.clamp_gamma)

    def __call__(self, z):
        self.clamp_params_()
        return golu(z, self.alpha, self.beta, self.gamma, self.approximator)


if __name__ == "__main__":
    key = jax.random.PRNGKey(0)
    x = jax.random.normal(key, (2, 4, 16, 16), dtype=jnp.float32)  # NCHW

    # exp approximator (module default).
    mod = GoLUPallas()
    y = mod(x)
    jax.block_until_ready(y)
    y_ref = x * 1.0 * jnp.exp(-1.0 * jnp.exp(-1.0 * x))
    assert y.shape == x.shape and y.dtype == x.dtype
    assert jnp.allclose(y, y_ref, atol=1e-5, rtol=1e-5)

    # tanh approximator — literal tanh/sqrt formula (matches torch numerics).
    # Tolerance is 1e-3 because (1 + tanh(u)) near saturation amplifies
    # last-ulp tanh differences between compute paths into ~1e-4 abs error.
    mod_tanh = GoLUPallas(approximator="tanh")
    y_t = mod_tanh(x)
    jax.block_until_ready(y_t)
    u = -1.0 * jnp.exp(-1.0 * x)
    y_tanh_ref = x * 1.0 * jnp.sqrt((1.0 + jnp.tanh(u)) / (1.0 - jnp.tanh(u)))
    assert y_t.shape == x.shape and y_t.dtype == x.dtype
    assert jnp.allclose(y_t, y_tanh_ref, atol=1e-3, rtol=1e-3)

    # bf16 path: exercises the (16, 128)-aligned tiling; math runs in f32
    # inside the kernel, I/O stays bf16.
    x_bf16 = x.astype(jnp.bfloat16)
    y_bf16 = mod(x_bf16)
    jax.block_until_ready(y_bf16)
    assert y_bf16.shape == x.shape and y_bf16.dtype == jnp.bfloat16
    assert jnp.allclose(
        y_bf16.astype(jnp.float32), y_ref, atol=1e-1, rtol=1e-1
    )

    # Ragged shape: exercises the aligned-prefix + jnp-tail path (no full-size
    # pad/slice HBM round trips).
    x_r = jax.random.normal(jax.random.PRNGKey(1), (3, 5, 7), dtype=jnp.float32)
    y_r = mod(x_r)
    jax.block_until_ready(y_r)
    y_r_ref = x_r * jnp.exp(-jnp.exp(-x_r))
    assert y_r.shape == x_r.shape
    assert jnp.allclose(y_r, y_r_ref, atol=1e-5, rtol=1e-5)

    # Larger ragged shape that mixes a kernel prefix with a jnp tail.
    x_m = jax.random.normal(jax.random.PRNGKey(2), (5, 17, 31), dtype=jnp.float32)
    y_m = mod(x_m)
    jax.block_until_ready(y_m)
    y_m_ref = x_m * jnp.exp(-jnp.exp(-x_m))
    assert y_m.shape == x_m.shape
    assert jnp.allclose(y_m, y_m_ref, atol=1e-5, rtol=1e-5)

    print("KERNEL_OK")
</pallas_src>

<mosaic_0001>
module attributes {stable_mosaic.version = 11 : i64} {
  func.func @_golu_exp_kernel(%arg0: i32, %arg1: memref<1xf32, #tpu.memory_space<smem>>, %arg2: memref<1xf32, #tpu.memory_space<smem>>, %arg3: memref<1xf32, #tpu.memory_space<smem>>, %arg4: memref<8x128xf32, #tpu.memory_space<vmem>>, %arg5: memref<8x128xf32, #tpu.memory_space<vmem>>) attributes {dimension_semantics = [#tpu.dimension_semantics<parallel>], iteration_bounds = array<i64: 2>, scalar_prefetch = 0 : i64, scratch_operands = 0 : i64, tpu.core_type = #tpu.core_type<tc>, window_params = [{transform_indices = @transform_0, window_bounds = array<i64: 1>}, {transform_indices = @transform_1, window_bounds = array<i64: 1>}, {transform_indices = @transform_2, window_bounds = array<i64: 1>}, {transform_indices = @transform_3, window_bounds = array<i64: 8, 128>}, {transform_indices = @transform_4, window_bounds = array<i64: 8, 128>}]} {
    %c0 = arith.constant 0 : index
    %c0_0 = arith.constant 0 : index
    %0 = vector.load %arg4[%c0, %c0_0] : memref<8x128xf32, #tpu.memory_space<vmem>>, vector<8x128xf32>
    %c0_1 = arith.constant 0 : index
    %1 = memref.load %arg1[%c0_1] : memref<1xf32, #tpu.memory_space<smem>>
    %c0_2 = arith.constant 0 : index
    %2 = memref.load %arg2[%c0_2] : memref<1xf32, #tpu.memory_space<smem>>
    %c0_3 = arith.constant 0 : index
    %3 = memref.load %arg3[%c0_3] : memref<1xf32, #tpu.memory_space<smem>>
    %4 = vector.broadcast %1 : f32 to vector<8x128xf32>
    %5 = arith.mulf %0, %4 : vector<8x128xf32>
    %cst = arith.constant 0.000000e+00 : f32
    %6 = arith.subf %cst, %2 : f32
    %cst_4 = arith.constant 0.000000e+00 : f32
    %7 = arith.subf %cst_4, %3 : f32
    %8 = vector.broadcast %7 : f32 to vector<8x128xf32>
    %9 = arith.mulf %8, %0 : vector<8x128xf32>
    %10 = math.exp %9 : vector<8x128xf32>
    %11 = vector.broadcast %6 : f32 to vector<8x128xf32>
    %12 = arith.mulf %11, %10 : vector<8x128xf32>
    %13 = math.exp %12 : vector<8x128xf32>
    %14 = arith.mulf %5, %13 : vector<8x128xf32>
    %c0_5 = arith.constant 0 : index
    %c0_6 = arith.constant 0 : index
    %15 = vector.load %arg5[%c0_5, %c0_6] : memref<8x128xf32, #tpu.memory_space<vmem>>, vector<8x128xf32>
    tpu.vector_store %arg5[%c0_5, %c0_6], %14 {strides = array<i32>} : memref<8x128xf32, #tpu.memory_space<vmem>>, vector<8x128xf32>,
    return
  }
  func.func @transform_0(%arg0: i32) -> i32 {
    %c0_i32 = arith.constant 0 : i32
    %c0_i32_0 = arith.constant 0 : i32
    return %c0_i32 : i32
  }
  func.func @transform_1(%arg0: i32) -> i32 {
    %c0_i32 = arith.constant 0 : i32
    %c0_i32_0 = arith.constant 0 : i32
    return %c0_i32 : i32
  }
  func.func @transform_2(%arg0: i32) -> i32 {
    %c0_i32 = arith.constant 0 : i32
    %c0_i32_0 = arith.constant 0 : i32
    return %c0_i32 : i32
  }
  func.func @transform_3(%arg0: i32) -> (i32, i32) {
    %c0_i32 = arith.constant 0 : i32
    %c0_i32_0 = arith.constant 0 : i32
    return %arg0, %c0_i32 : i32, i32
  }
  func.func @transform_4(%arg0: i32) -> (i32, i32) {
    %c0_i32 = arith.constant 0 : i32
    %c0_i32_0 = arith.constant 0 : i32
    return %arg0, %c0_i32 : i32, i32
  }
}

</mosaic_0001>

<bundles_post_ra>
// kernel: golu.1
= control target key start
LH: loop header
LB: loop body
LE: loop exit
PB: predicated region body
PF: predicated region fallthrough
CT: control target
= control target key end

     0   :  { %s330_s21 = smov 0   ;;  %s347_s0 = inlined_call_operand.<no memory space> [shape: f32[1], index: 0, kind: input, shape index: {}]   ;;  %s348_s1 = inlined_call_operand.<no memory space> [shape: f32[1], index: 1, kind: input, shape index: {}]   ;;  %s349_s2 = inlined_call_operand.<no memory space> [shape: f32[1], index: 2, kind: input, shape index: {}]   ;;  %s350_s3 = inlined_call_operand.vmem [shape: f32[16,128], index: 3, kind: input, shape index: {}]   ;;  %s351_s4 = inlined_call_operand.vmem [shape: f32[16,128], index: 4, kind: output, shape index: {}]  }
   0x1   :  { %9 = sst [smem:[#allocation2]] %s347_s0 }
   0x2   :  { %10 = sst [smem:[#allocation3]] %s348_s1 }
   0x3   :  { %11 = sst [smem:[#allocation4]] %s349_s2 }
   0x4 LB: > { %s267_s22 = sadd.s32 4294967295, %s294_s21   ;;  %p271_p0 = scmp.ge.s32.totalorder %s294_s21, 1  ;;  %s294_s21 = sphi %s330_s21, %s17_s21  }
   0x5   : > { %p164_p1 = scmp.lt.s32.totalorder %s294_s21, 3 }
   0x7   : > { %p165_p2 = pnand %p271_p0, %p164_p1 }
   0x8   : > { %p188_p3 = scmp.lt.s32.totalorder (!%p165_p2), %s267_s22, 1  ;;  %s199_s0 = sld [smem:[#allocation4]] (!%p165_p2) }
   0x9   : > { %168 = sbr.rel (%p165_p2) target bundleno = 43 (0x2b), region = 36  ;;  %s198_s25 = sld [smem:[#allocation3]] (!%p165_p2) }
   0xa   : > { %s197_s28 = sld [smem:[#allocation2]] (!%p165_p2) }
   0xe   : > { %s353_s22 = smov (!%p188_p3, %s267_s22), 1  ;;  %s203_s26 = ssub.f32 0.0, %s199_s0 }
   0xf   : > { %s272_s1 = sshll.u32 %s353_s22, 3  ;;  %s202_s27 = ssub.f32 0.0, %s198_s25 }
  0x10   : > { %s191_s24 = scalar_lea.vmem %s350_s3, %s272_s1  ;;  %v204_v1 = vstv %s203_s26  ;;  %v200_v8 = vstv %s197_s28  ;;  %s195_s5 = scalar_lea.vmem %s351_s4, %s272_s1 }
  0x11   : > { %v196_v0 = vld [vmem:[%s191_s24] sm:$0xff]  ;;  %v208_v4 = vstv %s202_s27 }
  0x12   : > { %v205_v2 = vmul.f32 %v204_v1, %v196_v0  ;;  %v201_v9 = vmul.f32 %v200_v8, %v196_v0 }
  0x14   : > { %v206_v3 = vmul.f32 1.442695, %v205_v2 }
  0x16   : > { %284 = vpow2.f32 %v206_v3 }
  0x1c   : > { %v285_v5 = vpop.eup %284 }
  0x1d   : > { %v209_v6 = vmul.f32 %v285_v5, %v208_v4 }
  0x1f   : > { %v210_v7 = vmul.f32 1.442695, %v209_v6 }
  0x21   : > { %286 = vpow2.f32 %v210_v7 }
  0x27   : > { %v287_v10 = vpop.eup %286 }
  0x28   : > { %v212_v11 = vmul.f32 %v287_v10, %v201_v9 }
  0x2a   : > { %213 = vst [vmem:[%s195_s5] sm:$0xff] %v212_v11 }
  0x2b PF: > { %s17_s21 = sadd.s32 1, %s294_s21  }
  0x2c   : > { %p14_p4 = scmp.ge.s32.totalorder %s17_s21, 4  }
  0x2e   :  { %16 = sbr.rel (!%p14_p4) target bundleno = 4 (0x4), region = 66 }

</bundles_post_ra>
